<compile_context>
chip_gen: v5e
topology: v5e:2x2
jax: 0.10.0
libtpu: 0.0.40
codegen_flags: <defaults>
</compile_context>

<pallas_src>
import math

import jax
import jax.numpy as jnp
from jax import lax
from jax.experimental import pallas as pl
from jax.experimental.pallas import tpu as pltpu


def _round_up(x, m):
    return ((x + m - 1) // m) * m


def ctrnn_forward(x, h0, w_in, w_hh, *, dt=None, tau=100.0,
                  time_block=32, batch_block=None, unroll=8,
                  matmul_dtype=jnp.bfloat16, io_dtype=jnp.float32,
                  vmem_budget_bytes=24 * (1 << 20)):
    """Pallas CTRNN forward.

    Args:
      x:    (T, B, I)  float32, network input (time-major like PyTorch).
      h0:   (B, H)     float32, initial hidden state.
      w_in: (H, I)     float32, input2h.weight (nn.Linear layout).
      w_hh: (H, H)     float32, h2h.weight     (nn.Linear layout).
      time_block:   recurrence steps per grid iteration (clamped to T).
      batch_block:  optional batch-tile size (multiple of 8).  Default: split
                    into two tiles when B_pad >= 16 so the leading "parallel"
                    grid axis can be sharded across TensorCores (v7x / megacore).
      unroll:       partial-unroll factor of the in-kernel time loop.
      matmul_dtype: MXU feed dtype for the recurrent matmul (bf16 default);
                    accumulation and the leaky update stay float32.
      io_dtype:     dtype of the streamed x_proj / output slabs (f32 default;
                    bf16 halves the kernel's HBM traffic at reduced precision).
      vmem_budget_bytes: target for double-buffered slabs + weights + scratch.
    Returns:
      (output, hidden): output is (T, B, H), hidden is (B, H).
    """
    T, B, I = x.shape
    H = w_in.shape[0]
    alpha = 1.0 if dt is None else float(dt) / float(tau)
    oma = 1.0 - alpha  # "oneminusalpha"

    # ---- wrapper-side constant work (one-time, not per recurrence step) ----
    # Fold alpha into both weights and pre-transpose them for the MXU.
    w_in_t = (alpha * w_in).T.astype(jnp.float32)             # (I, H)
    w_hh_t = (alpha * w_hh).T.astype(matmul_dtype)             # (H, H)

    # ---- TPU-friendly padded shapes (zeros are exact for this recurrence) ----
    TT = max(1, min(int(time_block), T))
    B_pad = _round_up(B, 8)                                    # sublane multiple
    H_pad = _round_up(H, 128)                                  # lane multiple
    if batch_block is None:
        if B_pad >= 16:
            # Two batch tiles so the "parallel" axis has work for megacore.
            TB = _round_up(pl.cdiv(B_pad, 2), 8)
        else:
            TB = B_pad
    else:
        TB = _round_up(int(batch_block), 8)
    B_pad = _round_up(B_pad, TB)
    nb = B_pad // TB

    # VMEM budget: in/out slabs are double-buffered, weight + h0 double-
    # buffered by default, plus the f32 hidden-state scratch.
    io_bytes = jnp.dtype(io_dtype).itemsize
    w_bytes = H_pad * H_pad * jnp.dtype(matmul_dtype).itemsize

    def _vmem_estimate(tt):
        slab = tt * TB * H_pad * io_bytes
        return (2 * slab) * 2 + 2 * w_bytes + 2 * TB * H_pad * 4 + TB * H_pad * 4

    while TT > 8 and _vmem_estimate(TT) > vmem_budget_bytes:
        TT = max(8, TT // 2)
    nt = pl.cdiv(T, TT)
    T_pad = nt * TT
    unroll = max(1, min(int(unroll), TT))
    vmem_limit = int(min(max(2 * _vmem_estimate(TT), 32 << 20), 64 << 20))

    # ---- hoisted, fully parallel input projection (one big GEMM) ----
    # Pad x (cheap: (T,B,I)) and w_in columns BEFORE the GEMM so it directly
    # emits the padded (T_pad, B_pad, H_pad) tensor -- no extra HBM pass.
    x_in = x.astype(jnp.float32)
    if T_pad > T or B_pad > B:
        x_in = jnp.pad(x_in, ((0, T_pad - T), (0, B_pad - B), (0, 0)))
    if H_pad > H:
        w_in_t = jnp.pad(w_in_t, ((0, 0), (0, H_pad - H)))
    x_proj_p = jnp.einsum("tbi,ih->tbh", x_in, w_in_t,
                          preferred_element_type=jnp.float32)
    if x_proj_p.dtype != io_dtype:
        x_proj_p = x_proj_p.astype(io_dtype)

    h0_p = h0.astype(jnp.float32)
    if B_pad > B or H_pad > H:
        h0_p = jnp.pad(h0_p, ((0, B_pad - B), (0, H_pad - H)))
    w_hh_t_p = w_hh_t
    if H_pad > H:
        w_hh_t_p = jnp.pad(w_hh_t_p, ((0, H_pad - H), (0, H_pad - H)))

    # ---- sequential recurrence kernel ----
    def kernel(xp_ref, h0_ref, wh_ref, out_ref, h_scr):
        t = pl.program_id(1)

        # (Re-)load the initial hidden state at the first time block of every
        # batch tile; the VMEM scratch carries it across time-grid steps.
        # NOTE: this relies on the time axis being the LAST (fastest) grid dim.
        @pl.when(t == 0)
        def _init():
            h_scr[...] = h0_ref[...]

        def step(k, h):
            # alpha is folded into both weights already; wh_ref is indexed
            # inside the dot so Mosaic streams it from VMEM (no vreg pinning).
            pre = xp_ref[k].astype(jnp.float32) + jnp.dot(
                h.astype(matmul_dtype), wh_ref[...],
                preferred_element_type=jnp.float32)
            if oma == 0.0:          # dt=None -> alpha == 1 specialization
                h_new = jnp.maximum(pre, 0.0)
            else:
                h_new = jnp.maximum(h * oma + pre, 0.0)
            out_ref[k] = h_new.astype(out_ref.dtype)
            return h_new

        h_scr[...] = lax.fori_loop(0, TT, step, h_scr[...], unroll=unroll)

    out_p = pl.pallas_call(
        kernel,
        out_shape=jax.ShapeDtypeStruct((T_pad, B_pad, H_pad), io_dtype),
        grid_spec=pltpu.PrefetchScalarGridSpec(
            num_scalar_prefetch=0,
            grid=(nb, nt),
            in_specs=[
                # TT time steps of the precomputed input projection.
                pl.BlockSpec((TT, TB, H_pad), lambda b, t: (t, b, 0)),
                # Initial hidden state for this batch tile.
                pl.BlockSpec((TB, H_pad), lambda b, t: (b, 0)),
                # Recurrent weight (pre-transposed, alpha-folded), constant.
                pl.BlockSpec((H_pad, H_pad), lambda b, t: (0, 0)),
            ],
            out_specs=pl.BlockSpec((TT, TB, H_pad), lambda b, t: (t, b, 0)),
            scratch_shapes=[pltpu.VMEM((TB, H_pad), jnp.float32)],
        ),
        compiler_params=pltpu.CompilerParams(
            # batch tiles are independent (megacore-shardable);
            # the time axis carries the recurrence -> "arbitrary".
            dimension_semantics=("parallel", "arbitrary"),
            vmem_limit_bytes=vmem_limit,
        ),
    )(x_proj_p, h0_p, w_hh_t_p)

    out = out_p
    if T_pad > T or B_pad > B or H_pad > H:
        out = out[:T, :B, :H]
    out = out.astype(x.dtype)
    h_last = out[T - 1]          # final hidden == last output step
    return out, h_last


def ctrnn_reference(x, h0, w_in, w_hh, *, dt=None, tau=100.0):
    """Pure-JAX reference matching the PyTorch forward."""
    alpha = 1.0 if dt is None else float(dt) / float(tau)
    oneminusalpha = 1.0 - alpha

    def step(h, x_t):
        pre = x_t @ w_in.T + h @ w_hh.T
        h_new = jnp.maximum(h * oneminusalpha + pre * alpha, 0.0)
        return h_new, h_new

    h_last, out = jax.lax.scan(step, h0, x)
    return out, h_last


if __name__ == "__main__":
    # Small shapes consistent with the module's forward signature:
    # input: (seq_len, batch, input_size); hidden: (batch, hidden_size).
    seq_len, batch, input_size, hidden_size = 8, 2, 4, 32

    key = jax.random.PRNGKey(0)
    k_x, k_wi, k_wh, k_xb = jax.random.split(key, 4)

    x = jax.random.normal(k_x, (seq_len, batch, input_size), dtype=jnp.float32)
    h0 = jnp.zeros((batch, hidden_size), dtype=jnp.float32)  # init_hidden()

    # Deterministic nn.Linear-style init: U(-1/sqrt(fan_in), 1/sqrt(fan_in)).
    bound_in = 1.0 / math.sqrt(input_size)
    bound_hh = 1.0 / math.sqrt(hidden_size)
    w_in = jax.random.uniform(k_wi, (hidden_size, input_size),
                              minval=-bound_in, maxval=bound_in,
                              dtype=jnp.float32)
    w_hh = jax.random.uniform(k_wh, (hidden_size, hidden_size),
                              minval=-bound_hh, maxval=bound_hh,
                              dtype=jnp.float32)

    # 1) Default path (bf16 MXU feed), dt=None (alpha == 1), like PyTorch.
    out, h_last = ctrnn_forward(x, h0, w_in, w_hh, dt=None)
    jax.block_until_ready((out, h_last))
    out_ref, h_ref = ctrnn_reference(x, h0, w_in, w_hh, dt=None)
    assert out.shape == (seq_len, batch, hidden_size)
    assert h_last.shape == (batch, hidden_size)
    assert jnp.allclose(out, out_ref, atol=3e-2, rtol=3e-2)
    assert jnp.allclose(h_last, h_ref, atol=3e-2, rtol=3e-2)

    # 2) Full-precision MXU feed: exact-to-1e-5 check of the kernel structure.
    out_f32, h_f32 = ctrnn_forward(x, h0, w_in, w_hh, dt=None,
                                   matmul_dtype=jnp.float32)
    jax.block_until_ready((out_f32, h_f32))
    assert jnp.allclose(out_f32, out_ref, atol=1e-5, rtol=1e-5)
    assert jnp.allclose(h_f32, h_ref, atol=1e-5, rtol=1e-5)

    # 3) dt != None (leaky-integration) path with T not a multiple of the time
    #    block (exercises time-axis padding plus the oma != 0 branch).
    out2, h2 = ctrnn_forward(x[:5], h0, w_in, w_hh, dt=10.0, time_block=4,
                             matmul_dtype=jnp.float32)
    jax.block_until_ready((out2, h2))
    out2_ref, h2_ref = ctrnn_reference(x[:5], h0, w_in, w_hh, dt=10.0)
    assert jnp.allclose(out2, out2_ref, atol=1e-5, rtol=1e-5)
    assert jnp.allclose(h2, h2_ref, atol=1e-5, rtol=1e-5)

    # 4) Larger batch: exercises the default two-tile "parallel" batch split
    #    (megacore path) plus batch padding.
    batch_big = 20
    xb = jax.random.normal(k_xb, (seq_len, batch_big, input_size),
                           dtype=jnp.float32)
    h0b = jnp.zeros((batch_big, hidden_size), dtype=jnp.float32)
    out3, h3 = ctrnn_forward(xb, h0b, w_in, w_hh, dt=None)
    jax.block_until_ready((out3, h3))
    out3_ref, h3_ref = ctrnn_reference(xb, h0b, w_in, w_hh, dt=None)
    assert out3.shape == (seq_len, batch_big, hidden_size)
    assert jnp.allclose(out3, out3_ref, atol=3e-2, rtol=3e-2)
    assert jnp.allclose(h3, h3_ref, atol=3e-2, rtol=3e-2)

    print("KERNEL_OK")
</pallas_src>

<mosaic_0001>
module attributes {stable_mosaic.version = 11 : i64} {
  func.func @kernel(%arg0: i32, %arg1: i32, %arg2: memref<8x8x128xf32, #tpu.memory_space<vmem>>, %arg3: memref<8x128xf32, #tpu.memory_space<vmem>>, %arg4: memref<128x128xbf16, #tpu.memory_space<vmem>>, %arg5: memref<8x8x128xf32, #tpu.memory_space<vmem>>, %arg6: memref<8x128xf32, #tpu.memory_space<vmem>>) attributes {dimension_semantics = [#tpu.dimension_semantics<parallel>, #tpu.dimension_semantics<arbitrary>], iteration_bounds = array<i64: 1, 1>, scalar_prefetch = 0 : i64, scratch_operands = 1 : i64, tpu.core_type = #tpu.core_type<tc>, window_params = [{transform_indices = @transform_0, window_bounds = array<i64: 8, 8, 128>}, {transform_indices = @transform_1, window_bounds = array<i64: 8, 128>}, {pipeline_mode = #tpu.pipeline_mode<synchronous>, transform_indices = @transform_2, window_bounds = array<i64: 128, 128>}, {transform_indices = @transform_3, window_bounds = array<i64: 8, 8, 128>}]} {
    %c0_i32 = arith.constant 0 : i32
    %0 = arith.cmpi eq, %arg1, %c0_i32 : i32
    %1 = arith.extui %0 : i1 to i32
    %c0_i32_0 = arith.constant 0 : i32
    %2 = arith.cmpi ne, %1, %c0_i32_0 : i32
    scf.if %2 {
      %c0_68 = arith.constant 0 : index
      %c0_69 = arith.constant 0 : index
      %109 = vector.load %arg3[%c0_68, %c0_69] : memref<8x128xf32, #tpu.memory_space<vmem>>, vector<8x128xf32>
      %c0_70 = arith.constant 0 : index
      %c0_71 = arith.constant 0 : index
      %110 = vector.load %arg6[%c0_70, %c0_71] : memref<8x128xf32, #tpu.memory_space<vmem>>, vector<8x128xf32>
      tpu.vector_store %arg6[%c0_70, %c0_71], %109 {strides = array<i32>} : memref<8x128xf32, #tpu.memory_space<vmem>>, vector<8x128xf32>,
    } else {
    }
    %c0 = arith.constant 0 : index
    %c0_1 = arith.constant 0 : index
    %3 = vector.load %arg6[%c0, %c0_1] : memref<8x128xf32, #tpu.memory_space<vmem>>, vector<8x128xf32>
    %c0_i32_2 = arith.constant 0 : i32
    %4 = arith.index_cast %c0_i32_2 : i32 to index
    %c0_3 = arith.constant 0 : index
    %c0_4 = arith.constant 0 : index
    %5 = vector.load %arg2[%4, %c0_3, %c0_4] : memref<8x8x128xf32, #tpu.memory_space<vmem>>, vector<1x8x128xf32>
    %6 = vector.shape_cast %5 : vector<1x8x128xf32> to vector<8x128xf32>
    %7 = arith.truncf %3 : vector<8x128xf32> to vector<8x128xbf16>
    %c0_5 = arith.constant 0 : index
    %c0_6 = arith.constant 0 : index
    %8 = vector.load %arg4[%c0_5, %c0_6] : memref<128x128xbf16, #tpu.memory_space<vmem>>, vector<128x128xbf16>
    %cst = arith.constant dense<0.000000e+00> : vector<8x128xf32>
    %9 = tpu.matmul %7, %8, %cst {dimension_numbers = #tpu.dot_dimension_numbers<[1], [0], [0], [1], [0, 0, 1, 1], [], []>} : vector<8x128xbf16>, vector<128x128xbf16>, vector<8x128xf32> -> vector<8x128xf32>
    %10 = arith.addf %6, %9 : vector<8x128xf32>
    %cst_7 = arith.constant 0.000000e+00 : f32
    %11 = vector.broadcast %cst_7 : f32 to vector<8x128xf32>
    %12 = arith.maximumf %10, %11 : vector<8x128xf32>
    %13 = arith.index_cast %c0_i32_2 : i32 to index
    %c0_8 = arith.constant 0 : index
    %c0_9 = arith.constant 0 : index
    %14 = vector.load %arg5[%13, %c0_8, %c0_9] : memref<8x8x128xf32, #tpu.memory_space<vmem>>, vector<1x8x128xf32>
    %15 = vector.shape_cast %14 : vector<1x8x128xf32> to vector<8x128xf32>
    %16 = vector.shape_cast %12 : vector<8x128xf32> to vector<1x8x128xf32>
    tpu.vector_store %arg5[%13, %c0_8, %c0_9], %16 {strides = array<i32>} : memref<8x8x128xf32, #tpu.memory_space<vmem>>, vector<1x8x128xf32>,
    %c1_i32 = arith.constant 1 : i32
    %17 = arith.index_cast %c1_i32 : i32 to index
    %c0_10 = arith.constant 0 : index
    %c0_11 = arith.constant 0 : index
    %18 = vector.load %arg2[%17, %c0_10, %c0_11] : memref<8x8x128xf32, #tpu.memory_space<vmem>>, vector<1x8x128xf32>
    %19 = vector.shape_cast %18 : vector<1x8x128xf32> to vector<8x128xf32>
    %20 = arith.truncf %12 : vector<8x128xf32> to vector<8x128xbf16>
    %c0_12 = arith.constant 0 : index
    %c0_13 = arith.constant 0 : index
    %21 = vector.load %arg4[%c0_12, %c0_13] : memref<128x128xbf16, #tpu.memory_space<vmem>>, vector<128x128xbf16>
    %cst_14 = arith.constant dense<0.000000e+00> : vector<8x128xf32>
    %22 = tpu.matmul %20, %21, %cst_14 {dimension_numbers = #tpu.dot_dimension_numbers<[1], [0], [0], [1], [0, 0, 1, 1], [], []>} : vector<8x128xbf16>, vector<128x128xbf16>, vector<8x128xf32> -> vector<8x128xf32>
    %23 = arith.addf %19, %22 : vector<8x128xf32>
    %cst_15 = arith.constant 0.000000e+00 : f32
    %24 = vector.broadcast %cst_15 : f32 to vector<8x128xf32>
    %25 = arith.maximumf %23, %24 : vector<8x128xf32>
    %26 = arith.index_cast %c1_i32 : i32 to index
    %c0_16 = arith.constant 0 : index
    %c0_17 = arith.constant 0 : index
    %27 = vector.load %arg5[%26, %c0_16, %c0_17] : memref<8x8x128xf32, #tpu.memory_space<vmem>>, vector<1x8x128xf32>
    %28 = vector.shape_cast %27 : vector<1x8x128xf32> to vector<8x128xf32>
    %29 = vector.shape_cast %25 : vector<8x128xf32> to vector<1x8x128xf32>
    tpu.vector_store %arg5[%26, %c0_16, %c0_17], %29 {strides = array<i32>} : memref<8x8x128xf32, #tpu.memory_space<vmem>>, vector<1x8x128xf32>,
    %c2_i32 = arith.constant 2 : i32
    %30 = arith.index_cast %c2_i32 : i32 to index
    %c0_18 = arith.constant 0 : index
    %c0_19 = arith.constant 0 : index
    %31 = vector.load %arg2[%30, %c0_18, %c0_19] : memref<8x8x128xf32, #tpu.memory_space<vmem>>, vector<1x8x128xf32>
    %32 = vector.shape_cast %31 : vector<1x8x128xf32> to vector<8x128xf32>
    %33 = arith.truncf %25 : vector<8x128xf32> to vector<8x128xbf16>
    %c0_20 = arith.constant 0 : index
    %c0_21 = arith.constant 0 : index
    %34 = vector.load %arg4[%c0_20, %c0_21] : memref<128x128xbf16, #tpu.memory_space<vmem>>, vector<128x128xbf16>
    %cst_22 = arith.constant dense<0.000000e+00> : vector<8x128xf32>
    %35 = tpu.matmul %33, %34, %cst_22 {dimension_numbers = #tpu.dot_dimension_numbers<[1], [0], [0], [1], [0, 0, 1, 1], [], []>} : vector<8x128xbf16>, vector<128x128xbf16>, vector<8x128xf32> -> vector<8x128xf32>
    %36 = arith.addf %32, %35 : vector<8x128xf32>
    %cst_23 = arith.constant 0.000000e+00 : f32
    %37 = vector.broadcast %cst_23 : f32 to vector<8x128xf32>
    %38 = arith.maximumf %36, %37 : vector<8x128xf32>
    %39 = arith.index_cast %c2_i32 : i32 to index
    %c0_24 = arith.constant 0 : index
    %c0_25 = arith.constant 0 : index
    %40 = vector.load %arg5[%39, %c0_24, %c0_25] : memref<8x8x128xf32, #tpu.memory_space<vmem>>, vector<1x8x128xf32>
    %41 = vector.shape_cast %40 : vector<1x8x128xf32> to vector<8x128xf32>
    %42 = vector.shape_cast %38 : vector<8x128xf32> to vector<1x8x128xf32>
    tpu.vector_store %arg5[%39, %c0_24, %c0_25], %42 {strides = array<i32>} : memref<8x8x128xf32, #tpu.memory_space<vmem>>, vector<1x8x128xf32>,
    %c3_i32 = arith.constant 3 : i32
    %43 = arith.index_cast %c3_i32 : i32 to index
    %c0_26 = arith.constant 0 : index
    %c0_27 = arith.constant 0 : index
    %44 = vector.load %arg2[%43, %c0_26, %c0_27] : memref<8x8x128xf32, #tpu.memory_space<vmem>>, vector<1x8x128xf32>
    %45 = vector.shape_cast %44 : vector<1x8x128xf32> to vector<8x128xf32>
    %46 = arith.truncf %38 : vector<8x128xf32> to vector<8x128xbf16>
    %c0_28 = arith.constant 0 : index
    %c0_29 = arith.constant 0 : index
    %47 = vector.load %arg4[%c0_28, %c0_29] : memref<128x128xbf16, #tpu.memory_space<vmem>>, vector<128x128xbf16>
    %cst_30 = arith.constant dense<0.000000e+00> : vector<8x128xf32>
    %48 = tpu.matmul %46, %47, %cst_30 {dimension_numbers = #tpu.dot_dimension_numbers<[1], [0], [0], [1], [0, 0, 1, 1], [], []>} : vector<8x128xbf16>, vector<128x128xbf16>, vector<8x128xf32> -> vector<8x128xf32>
    %49 = arith.addf %45, %48 : vector<8x128xf32>
    %cst_31 = arith.constant 0.000000e+00 : f32
    %50 = vector.broadcast %cst_31 : f32 to vector<8x128xf32>
    %51 = arith.maximumf %49, %50 : vector<8x128xf32>
    %52 = arith.index_cast %c3_i32 : i32 to index
    %c0_32 = arith.constant 0 : index
    %c0_33 = arith.constant 0 : index
    %53 = vector.load %arg5[%52, %c0_32, %c0_33] : memref<8x8x128xf32, #tpu.memory_space<vmem>>, vector<1x8x128xf32>
    %54 = vector.shape_cast %53 : vector<1x8x128xf32> to vector<8x128xf32>
    %55 = vector.shape_cast %51 : vector<8x128xf32> to vector<1x8x128xf32>
    tpu.vector_store %arg5[%52, %c0_32, %c0_33], %55 {strides = array<i32>} : memref<8x8x128xf32, #tpu.memory_space<vmem>>, vector<1x8x128xf32>,
    %c4_i32 = arith.constant 4 : i32
    %56 = arith.index_cast %c4_i32 : i32 to index
    %c0_34 = arith.constant 0 : index
    %c0_35 = arith.constant 0 : index
    %57 = vector.load %arg2[%56, %c0_34, %c0_35] : memref<8x8x128xf32, #tpu.memory_space<vmem>>, vector<1x8x128xf32>
    %58 = vector.shape_cast %57 : vector<1x8x128xf32> to vector<8x128xf32>
    %59 = arith.truncf %51 : vector<8x128xf32> to vector<8x128xbf16>
    %c0_36 = arith.constant 0 : index
    %c0_37 = arith.constant 0 : index
    %60 = vector.load %arg4[%c0_36, %c0_37] : memref<128x128xbf16, #tpu.memory_space<vmem>>, vector<128x128xbf16>
    %cst_38 = arith.constant dense<0.000000e+00> : vector<8x128xf32>
    %61 = tpu.matmul %59, %60, %cst_38 {dimension_numbers = #tpu.dot_dimension_numbers<[1], [0], [0], [1], [0, 0, 1, 1], [], []>} : vector<8x128xbf16>, vector<128x128xbf16>, vector<8x128xf32> -> vector<8x128xf32>
    %62 = arith.addf %58, %61 : vector<8x128xf32>
    %cst_39 = arith.constant 0.000000e+00 : f32
    %63 = vector.broadcast %cst_39 : f32 to vector<8x128xf32>
    %64 = arith.maximumf %62, %63 : vector<8x128xf32>
    %65 = arith.index_cast %c4_i32 : i32 to index
    %c0_40 = arith.constant 0 : index
    %c0_41 = arith.constant 0 : index
    %66 = vector.load %arg5[%65, %c0_40, %c0_41] : memref<8x8x128xf32, #tpu.memory_space<vmem>>, vector<1x8x128xf32>
    %67 = vector.shape_cast %66 : vector<1x8x128xf32> to vector<8x128xf32>
    %68 = vector.shape_cast %64 : vector<8x128xf32> to vector<1x8x128xf32>
    tpu.vector_store %arg5[%65, %c0_40, %c0_41], %68 {strides = array<i32>} : memref<8x8x128xf32, #tpu.memory_space<vmem>>, vector<1x8x128xf32>,
    %c5_i32 = arith.constant 5 : i32
    %69 = arith.index_cast %c5_i32 : i32 to index
    %c0_42 = arith.constant 0 : index
    %c0_43 = arith.constant 0 : index
    %70 = vector.load %arg2[%69, %c0_42, %c0_43] : memref<8x8x128xf32, #tpu.memory_space<vmem>>, vector<1x8x128xf32>
    %71 = vector.shape_cast %70 : vector<1x8x128xf32> to vector<8x128xf32>
    %72 = arith.truncf %64 : vector<8x128xf32> to vector<8x128xbf16>
    %c0_44 = arith.constant 0 : index
    %c0_45 = arith.constant 0 : index
    %73 = vector.load %arg4[%c0_44, %c0_45] : memref<128x128xbf16, #tpu.memory_space<vmem>>, vector<128x128xbf16>
    %cst_46 = arith.constant dense<0.000000e+00> : vector<8x128xf32>
    %74 = tpu.matmul %72, %73, %cst_46 {dimension_numbers = #tpu.dot_dimension_numbers<[1], [0], [0], [1], [0, 0, 1, 1], [], []>} : vector<8x128xbf16>, vector<128x128xbf16>, vector<8x128xf32> -> vector<8x128xf32>
    %75 = arith.addf %71, %74 : vector<8x128xf32>
    %cst_47 = arith.constant 0.000000e+00 : f32
    %76 = vector.broadcast %cst_47 : f32 to vector<8x128xf32>
    %77 = arith.maximumf %75, %76 : vector<8x128xf32>
    %78 = arith.index_cast %c5_i32 : i32 to index
    %c0_48 = arith.constant 0 : index
    %c0_49 = arith.constant 0 : index
    %79 = vector.load %arg5[%78, %c0_48, %c0_49] : memref<8x8x128xf32, #tpu.memory_space<vmem>>, vector<1x8x128xf32>
    %80 = vector.shape_cast %79 : vector<1x8x128xf32> to vector<8x128xf32>
    %81 = vector.shape_cast %77 : vector<8x128xf32> to vector<1x8x128xf32>
    tpu.vector_store %arg5[%78, %c0_48, %c0_49], %81 {strides = array<i32>} : memref<8x8x128xf32, #tpu.memory_space<vmem>>, vector<1x8x128xf32>,
    %c6_i32 = arith.constant 6 : i32
    %82 = arith.index_cast %c6_i32 : i32 to index
    %c0_50 = arith.constant 0 : index
    %c0_51 = arith.constant 0 : index
    %83 = vector.load %arg2[%82, %c0_50, %c0_51] : memref<8x8x128xf32, #tpu.memory_space<vmem>>, vector<1x8x128xf32>
    %84 = vector.shape_cast %83 : vector<1x8x128xf32> to vector<8x128xf32>
    %85 = arith.truncf %77 : vector<8x128xf32> to vector<8x128xbf16>
    %c0_52 = arith.constant 0 : index
    %c0_53 = arith.constant 0 : index
    %86 = vector.load %arg4[%c0_52, %c0_53] : memref<128x128xbf16, #tpu.memory_space<vmem>>, vector<128x128xbf16>
    %cst_54 = arith.constant dense<0.000000e+00> : vector<8x128xf32>
    %87 = tpu.matmul %85, %86, %cst_54 {dimension_numbers = #tpu.dot_dimension_numbers<[1], [0], [0], [1], [0, 0, 1, 1], [], []>} : vector<8x128xbf16>, vector<128x128xbf16>, vector<8x128xf32> -> vector<8x128xf32>
    %88 = arith.addf %84, %87 : vector<8x128xf32>
    %cst_55 = arith.constant 0.000000e+00 : f32
    %89 = vector.broadcast %cst_55 : f32 to vector<8x128xf32>
    %90 = arith.maximumf %88, %89 : vector<8x128xf32>
    %91 = arith.index_cast %c6_i32 : i32 to index
    %c0_56 = arith.constant 0 : index
    %c0_57 = arith.constant 0 : index
    %92 = vector.load %arg5[%91, %c0_56, %c0_57] : memref<8x8x128xf32, #tpu.memory_space<vmem>>, vector<1x8x128xf32>
    %93 = vector.shape_cast %92 : vector<1x8x128xf32> to vector<8x128xf32>
    %94 = vector.shape_cast %90 : vector<8x128xf32> to vector<1x8x128xf32>
    tpu.vector_store %arg5[%91, %c0_56, %c0_57], %94 {strides = array<i32>} : memref<8x8x128xf32, #tpu.memory_space<vmem>>, vector<1x8x128xf32>,
    %c7_i32 = arith.constant 7 : i32
    %95 = arith.index_cast %c7_i32 : i32 to index
    %c0_58 = arith.constant 0 : index
    %c0_59 = arith.constant 0 : index
    %96 = vector.load %arg2[%95, %c0_58, %c0_59] : memref<8x8x128xf32, #tpu.memory_space<vmem>>, vector<1x8x128xf32>
    %97 = vector.shape_cast %96 : vector<1x8x128xf32> to vector<8x128xf32>
    %98 = arith.truncf %90 : vector<8x128xf32> to vector<8x128xbf16>
    %c0_60 = arith.constant 0 : index
    %c0_61 = arith.constant 0 : index
    %99 = vector.load %arg4[%c0_60, %c0_61] : memref<128x128xbf16, #tpu.memory_space<vmem>>, vector<128x128xbf16>
    %cst_62 = arith.constant dense<0.000000e+00> : vector<8x128xf32>
    %100 = tpu.matmul %98, %99, %cst_62 {dimension_numbers = #tpu.dot_dimension_numbers<[1], [0], [0], [1], [0, 0, 1, 1], [], []>} : vector<8x128xbf16>, vector<128x128xbf16>, vector<8x128xf32> -> vector<8x128xf32>
    %101 = arith.addf %97, %100 : vector<8x128xf32>
    %cst_63 = arith.constant 0.000000e+00 : f32
    %102 = vector.broadcast %cst_63 : f32 to vector<8x128xf32>
    %103 = arith.maximumf %101, %102 : vector<8x128xf32>
    %104 = arith.index_cast %c7_i32 : i32 to index
    %c0_64 = arith.constant 0 : index
    %c0_65 = arith.constant 0 : index
    %105 = vector.load %arg5[%104, %c0_64, %c0_65] : memref<8x8x128xf32, #tpu.memory_space<vmem>>, vector<1x8x128xf32>
    %106 = vector.shape_cast %105 : vector<1x8x128xf32> to vector<8x128xf32>
    %107 = vector.shape_cast %103 : vector<8x128xf32> to vector<1x8x128xf32>
    tpu.vector_store %arg5[%104, %c0_64, %c0_65], %107 {strides = array<i32>} : memref<8x8x128xf32, #tpu.memory_space<vmem>>, vector<1x8x128xf32>,
    %c8_i32 = arith.constant 8 : i32
    %c0_66 = arith.constant 0 : index
    %c0_67 = arith.constant 0 : index
    %108 = vector.load %arg6[%c0_66, %c0_67] : memref<8x128xf32, #tpu.memory_space<vmem>>, vector<8x128xf32>
    tpu.vector_store %arg6[%c0_66, %c0_67], %103 {strides = array<i32>} : memref<8x128xf32, #tpu.memory_space<vmem>>, vector<8x128xf32>,
    return
  }
  func.func @transform_0(%arg0: i32, %arg1: i32) -> (i32, i32, i32) {
    %c0_i32 = arith.constant 0 : i32
    %c0_i32_0 = arith.constant 0 : i32
    return %arg1, %arg0, %c0_i32 : i32, i32, i32
  }
  func.func @transform_1(%arg0: i32, %arg1: i32) -> (i32, i32) {
    %c0_i32 = arith.constant 0 : i32
    %c0_i32_0 = arith.constant 0 : i32
    return %arg0, %c0_i32 : i32, i32
  }
  func.func @transform_2(%arg0: i32, %arg1: i32) -> (i32, i32) {
    %c0_i32 = arith.constant 0 : i32
    %c0_i32_0 = arith.constant 0 : i32
    %c0_i32_1 = arith.constant 0 : i32
    return %c0_i32, %c0_i32_0 : i32, i32
  }
  func.func @transform_3(%arg0: i32, %arg1: i32) -> (i32, i32, i32) {
    %c0_i32 = arith.constant 0 : i32
    %c0_i32_0 = arith.constant 0 : i32
    return %arg1, %arg0, %c0_i32 : i32, i32, i32
  }
}

</mosaic_0001>

<bundles_post_ra>
// kernel: tpu_custom_call.1
= control target key start
LH: loop header
LB: loop body
LE: loop exit
PB: predicated region body
PF: predicated region fallthrough
CT: control target
= control target key end

     0   :  { %8 = vsyncpa [#allocation4], 0  ;;  %s1234_s0 = inlined_call_operand.hbm [shape: f32[8,8,128], index: 0, kind: input, shape index: {}]   ;;  %s1235_s1 = inlined_call_operand.hbm [shape: f32[8,128], index: 1, kind: input, shape index: {}]   ;;  %s1236_s2 = inlined_call_operand.hbm [shape: bf16[128,128], index: 2, kind: input, shape index: {}]   ;;  %s1237_s3 = inlined_call_operand.hbm [shape: f32[8,8,128], index: 3, kind: output, shape index: {}]  }
   0x1   :  { %9 = vsyncpa [#allocation7], 0  ;;  %s29_s14 = sshll.u32 %s1235_s1, 4  ;;  %s30_s14 = int_to_ptr.hbm [resolvable:$true] %s29_s14 }
   0x2   :  { %10 = vsyncpa [#allocation5], 0  ;;  %s1188_s15 = smov [#allocation6]   ;;  %s15_s19 = sshll.u32 %s1234_s0, 4  ;;  %s16_s19 = int_to_ptr.hbm [resolvable:$true] %s15_s19 }
   0x3   :  { %s31_s16 = sshll.u32 %s1188_s15, 4  ;;  %s1189_s20 = smov [#allocation3]   ;;  %s32_s16 = int_to_ptr.vmem [resolvable:$true] %s31_s16 }
   0x4   :  { %34 = dma.hbm_to_vmem [thread:$0]  %s30_s14, 128, %s32_s16, [#allocation7]  }
   0x5   :  { %s17_s21 = sshll.u32 %s1189_s20, 4  ;;  %s1190_s22 = smov 128   ;;  %s18_s21 = int_to_ptr.vmem [resolvable:$true] %s17_s21 }
   0x6   :  { %s1191_s23 = smov 8   ;;  %s39_s25 = sshll.u32 %s1236_s2, 4  ;;  %s40_s25 = int_to_ptr.hbm [resolvable:$true] %s39_s25 }
   0x7   :  { %23 = dma.hbm_to_vmem [thread:$0]  %s16_s19, 1024, %s18_s21, [#allocation4], %s1190_s22, %s1190_s22, %s1191_s23  }
   0x8   :  { %s1192_s26 = smov [#allocation8]   ;;  %s1193_s0 = smov 64  }
   0x9   :  { %s41_s27 = sshll.u32 %s1192_s26, 4  ;;  %s1194_s28 = smov 4   ;;  %s42_s27 = int_to_ptr.vmem [resolvable:$true] %s41_s27 }
   0xa   :  { %47 = dma.hbm_to_vmem [thread:$0]  %s40_s25, 1024, %s42_s27, [#allocation7], %s1193_s0, %s1193_s0, %s1194_s28  }
   0xb   :  { %1182 = dma.done.wait [#allocation4], 1024  }
   0xc   :  { %1183 = vsyncadd [#allocation4], 4294966272 }
   0xd   :  { %1184 = dma.done.wait [#allocation7], 1152  }
   0xe   :  { %1185 = vsyncadd [#allocation7], 4294966144  ;;  %v1021_v0 = vld [vmem:[#allocation8 + $0x38] sm:$0xff]  ;;  %v1020_v1 = vld [vmem:[#allocation8 + $0x30] sm:$0xff]  ;;  %s1195_s2 = smov [#allocation9]   ;;  %s744_s5 = sshll.u32 %s1237_s3, 4  ;;  %s745_s5 = int_to_ptr.hbm [resolvable:$true] %s744_s5 }
   0xf   :  { %133 = vmatpush.bf16.msra.mxu0 %v1021_v0  ;;  %v1029_v2 = vld [vmem:[#allocation8 + $0x38] sm:$0xff]  ;;  %v1028_v3 = vld [vmem:[#allocation8 + $0x30] sm:$0xff]  ;;  %v1019_v4 = vld [vmem:[#allocation8 + $0x28] sm:$0xff]  ;;  %s742_s29 = sshll.u32 %s1195_s2, 4  ;;  %s743_s29 = int_to_ptr.vmem [resolvable:$true] %s742_s29 }
  0x10   :  { %216 = vmatpush.bf16.msra.mxu1 %v1029_v2  ;;  %v1027_v5 = vld [vmem:[#allocation8 + $0x28] sm:$0xff]  ;;  %v1018_v6 = vld [vmem:[#allocation8 + $0x20] sm:$0xff]  ;;  %v1017_v8 = vld [vmem:[#allocation8 + $0x18] sm:$0xff] }
  0x11   :  { %v1026_v7 = vld [vmem:[#allocation8 + $0x20] sm:$0xff]  ;;  %v1025_v9 = vld [vmem:[#allocation8 + $0x18] sm:$0xff]  ;;  %v1016_v10 = vld [vmem:[#allocation8 + $0x10] sm:$0xff] }
  0x12   :  { %v1024_v11 = vld [vmem:[#allocation8 + $0x10] sm:$0xff]  ;;  %v1015_v12 = vld [vmem:[#allocation8 + $0x8] sm:$0xff]  ;;  %v1014_v13 = vld [vmem:[#allocation8] sm:$0xff] }
  0x13   :  { %134 = vmatpush.bf16.msra.mxu0 %v1020_v1  ;;  %v64_v14 = vld [vmem:[#allocation6] sm:$0xff]  ;;  %v1023_v16 = vld [vmem:[#allocation8 + $0x8] sm:$0xff]  ;;  %v1022_v17 = vld [vmem:[#allocation8] sm:$0xff] }
  0x14   :  { %217 = vmatpush.bf16.msra.mxu1 %v1028_v3  ;;  %v68_v15 = vpack.c.bf16 %v64_v14, %v64_v14  ;;  %v1037_v18 = vld [vmem:[#allocation8 + $0x38] sm:$0xff]  ;;  %v1036_v19 = vld [vmem:[#allocation8 + $0x30] sm:$0xff]  ;;  %v1035_v20 = vld [vmem:[#allocation8 + $0x28] sm:$0xff] }
  0x15   :  { %300 = vmatpush.bf16.msra.mxu2 %v1037_v18  ;;  %v1034_v21 = vld [vmem:[#allocation8 + $0x20] sm:$0xff]  ;;  %v1033_v22 = vld [vmem:[#allocation8 + $0x18] sm:$0xff]  ;;  %v1032_v23 = vld [vmem:[#allocation8 + $0x10] sm:$0xff] }
  0x16   :  { %v67_v24 = vld [vmem:[#allocation3] sm:$0xff]  ;;  %v1031_v30 = vld [vmem:[#allocation8 + $0x8] sm:$0xff]  ;;  %v1030_v31 = vld [vmem:[#allocation8] sm:$0xff] }
  0x17   :  { %135 = vmatpush.bf16.msra.mxu0 %v1019_v4  ;;  %v1045_v32 = vld [vmem:[#allocation8 + $0x38] sm:$0xff]  ;;  %v1044_v33 = vld [vmem:[#allocation8 + $0x30] sm:$0xff]  ;;  %v1043_v34 = vld [vmem:[#allocation8 + $0x28] sm:$0xff] }
  0x18   :  { %218 = vmatpush.bf16.msra.mxu1 %v1027_v5  ;;  %384 = vmatpush.bf16.msra.mxu3 %v1045_v32  ;;  %v1042_v35 = vld [vmem:[#allocation8 + $0x20] sm:$0xff]  ;;  %v1041_v36 = vld [vmem:[#allocation8 + $0x18] sm:$0xff]  ;;  %v1040_v37 = vld [vmem:[#allocation8 + $0x10] sm:$0xff] }
  0x19   :  { %301 = vmatpush.bf16.msra.mxu2 %v1036_v19  ;;  %v150_v38 = vld [vmem:[#allocation3 + $0x8] sm:$0xff]  ;;  %v1039_v44 = vld [vmem:[#allocation8 + $0x8] sm:$0xff]  ;;  %v1053_v46 = vld [vmem:[#allocation8 + $0x38] sm:$0xff] }
  0x1a   :  { %v1038_v45 = vld [vmem:[#allocation8] sm:$0xff]  ;;  %v1052_v47 = vld [vmem:[#allocation8 + $0x30] sm:$0xff]  ;;  %v1051_v48 = vld [vmem:[#allocation8 + $0x28] sm:$0xff] }
  0x1b   :  { %136 = vmatpush.bf16.msra.mxu0 %v1018_v6  ;;  %v1050_v49 = vld [vmem:[#allocation8 + $0x20] sm:$0xff]  ;;  %v1049_v50 = vld [vmem:[#allocation8 + $0x18] sm:$0xff]  ;;  %v1048_v51 = vld [vmem:[#allocation8 + $0x10] sm:$0xff] }
  0x1c   :  { %219 = vmatpush.bf16.msra.mxu1 %v1026_v7  ;;  %385 = vmatpush.bf16.msra.mxu3 %v1044_v33  ;;  %v234_v52 = vld [vmem:[#allocation3 + $0x10] sm:$0xff]  ;;  %v1046_v59 = vld [vmem:[#allocation8] sm:$0xff]  ;;  %v1061_v60 = vld [vmem:[#allocation8 + $0x38] sm:$0xff] }
  0x1d   :  { %302 = vmatpush.bf16.msra.mxu2 %v1035_v20  ;;  %v1047_v58 = vld [vmem:[#allocation8 + $0x8] sm:$0xff]  ;;  %v1060_v61 = vld [vmem:[#allocation8 + $0x30] sm:$0xff]  ;;  %v1058_v63 = vld [vmem:[#allocation8 + $0x20] sm:$0xff] }
  0x1e   :  { %v1059_v62 = vld [vmem:[#allocation8 + $0x28] sm:$0xff]  ;;  %v1057_v0 = vld [vmem:[#allocation8 + $0x18] sm:$0xff]  ;;  %v1056_v1 = vld [vmem:[#allocation8 + $0x10] sm:$0xff] }
  0x1f   :  { %137 = vmatpush.bf16.msra.mxu0 %v1017_v8  ;;  %v318_v2 = vld [vmem:[#allocation3 + $0x18] sm:$0xff]  ;;  %v1055_v8 = vld [vmem:[#allocation8 + $0x8] sm:$0xff]  ;;  %v1065_v14 = vld [vmem:[#allocation8 + $0x18] sm:$0xff] }
  0x20   :  { %220 = vmatpush.bf16.msra.mxu1 %v1025_v9  ;;  %386 = vmatpush.bf16.msra.mxu3 %v1043_v34  ;;  %v1054_v9 = vld [vmem:[#allocation8] sm:$0xff] }
  0x21   :  { %303 = vmatpush.bf16.msra.mxu2 %v1034_v21 }
  0x23   :  { %138 = vmatpush.bf16.msra.mxu0 %v1016_v10  ;;  %v1069_v10 = vld [vmem:[#allocation8 + $0x38] sm:$0xff] }
  0x24   :  { %221 = vmatpush.bf16.msra.mxu1 %v1024_v11  ;;  %387 = vmatpush.bf16.msra.mxu3 %v1042_v35  ;;  %v1068_v11 = vld [vmem:[#allocation8 + $0x30] sm:$0xff] }
  0x25   :  { %304 = vmatpush.bf16.msra.mxu2 %v1033_v22  ;;  %v1063_v22 = vld [vmem:[#allocation8 + $0x8] sm:$0xff] }
  0x27   :  { %139 = vmatpush.bf16.msra.mxu0 %v1015_v12  ;;  %v1067_v12 = vld [vmem:[#allocation8 + $0x28] sm:$0xff] }
  0x28   :  { %222 = vmatpush.bf16.msra.mxu1 %v1023_v16  ;;  %388 = vmatpush.bf16.msra.mxu3 %v1041_v36  ;;  %v402_v16 = vld [vmem:[#allocation3 + $0x20] sm:$0xff]  ;;  %v1071_v36 = vld [vmem:[#allocation8 + $0x8] sm:$0xff] }
  0x29   :  { %305 = vmatpush.bf16.msra.mxu2 %v1032_v23  ;;  %v1062_v23 = vld [vmem:[#allocation8] sm:$0xff] }
  0x2b   :  { %140 = vmatpush.bf16.msra.mxu0 %v1014_v13  ;;  %v1066_v13 = vld [vmem:[#allocation8 + $0x20] sm:$0xff] }
  0x2c   :  { %223 = vmatpush.bf16.msra.mxu1 %v1022_v17  ;;  %389 = vmatpush.bf16.msra.mxu3 %v1040_v37  ;;  %v1070_v37 = vld [vmem:[#allocation8] sm:$0xff] }
  0x2d   :  { %306 = vmatpush.bf16.msra.mxu2 %v1031_v30  ;;  %v486_v30 = vld [vmem:[#allocation3 + $0x28] sm:$0xff] }
  0x2e   :  { %141 = vmatmul.bf16.vlgmr.msra.gmra.mxu0 %v68_v15  ;;  %v1064_v15 = vld [vmem:[#allocation8 + $0x10] sm:$0xff] }
  0x2f   :  { %468 = vmatpush.bf16.msrb.mxu0 %v1053_v46 }
  0x30   :  { %390 = vmatpush.bf16.msra.mxu3 %v1039_v44  ;;  %552 = vmatpush.bf16.msrb.mxu1 %v1061_v60  ;;  %v654_v44 = vld [vmem:[#allocation3 + $0x38] sm:$0xff] }
  0x31   :  { %307 = vmatpush.bf16.msra.mxu2 %v1030_v31 }
  0x33   :  { %469 = vmatpush.bf16.msrb.mxu0 %v1052_v47 }
  0x34   :  { %391 = vmatpush.bf16.msra.mxu3 %v1038_v45  ;;  %553 = vmatpush.bf16.msrb.mxu1 %v1060_v61 }
  0x35   :  { %636 = vmatpush.bf16.msrb.mxu2 %v1069_v10 }
  0x37   :  { %470 = vmatpush.bf16.msrb.mxu0 %v1051_v48 }
  0x38   :  { %554 = vmatpush.bf16.msrb.mxu1 %v1059_v62 }
  0x39   :  { %637 = vmatpush.bf16.msrb.mxu2 %v1068_v11 }
  0x3b   :  { %471 = vmatpush.bf16.msrb.mxu0 %v1050_v49 }
  0x3c   :  { %555 = vmatpush.bf16.msrb.mxu1 %v1058_v63 }
  0x3d   :  { %638 = vmatpush.bf16.msrb.mxu2 %v1067_v12 }
  0x3f   :  { %472 = vmatpush.bf16.msrb.mxu0 %v1049_v50 }
  0x40   :  { %556 = vmatpush.bf16.msrb.mxu1 %v1057_v0 }
  0x41   :  { %639 = vmatpush.bf16.msrb.mxu2 %v1066_v13 }
  0x43   :  { %473 = vmatpush.bf16.msrb.mxu0 %v1048_v51 }
  0x44   :  { %557 = vmatpush.bf16.msrb.mxu1 %v1056_v1 }
  0x45   :  { %640 = vmatpush.bf16.msrb.mxu2 %v1065_v14 }
  0x47   :  { %474 = vmatpush.bf16.msrb.mxu0 %v1047_v58 }
  0x48   :  { %558 = vmatpush.bf16.msrb.mxu1 %v1055_v8 }
  0x49   :  { %641 = vmatpush.bf16.msrb.mxu2 %v1064_v15 }
  0x4b   :  { %475 = vmatpush.bf16.msrb.mxu0 %v1046_v59 }
  0x4c   :  { %559 = vmatpush.bf16.msrb.mxu1 %v1054_v9 }
  0x4d   :  { %642 = vmatpush.bf16.msrb.mxu2 %v1063_v22 }
  0x51   :  { %643 = vmatpush.bf16.msrb.mxu2 %v1062_v23 }
  0xab   :  { %v142_v25 = vpop.f32.mrf.mxu0 }
  0xac   :  { %v146_v26 = vadd.f32 %v142_v25, %v67_v24  ;;  %v1077_v24 = vld [vmem:[#allocation8 + $0x38] sm:$0xff]  ;;  %v1076_v25 = vld [vmem:[#allocation8 + $0x30] sm:$0xff] }
  0xad   :  { %720 = vmatpush.bf16.msrb.mxu3 %v1077_v24 }
  0xae   :  { %v147_v27 = vmax.f32 %v146_v26, 0.0  ;;  %v1075_v26 = vld [vmem:[#allocation8 + $0x28] sm:$0xff] }
  0xb0   :  { %148 = vst [vmem:[#allocation9] sm:$0xff] %v147_v27  ;;  %v151_v28 = vpack.c.bf16 %v147_v27, %v147_v27  ;;  %v1074_v27 = vld [vmem:[#allocation8 + $0x20] sm:$0xff] }
  0xb1   :  { %721 = vmatpush.bf16.msrb.mxu3 %v1076_v25 }
  0xb2   :  { %224 = vmatmul.bf16.vlgmr.msra.gmra.mxu1 %v151_v28  ;;  %v1073_v28 = vld [vmem:[#allocation8 + $0x18] sm:$0xff] }
  0xb3   :  { %v144_v29 = vpop.f32.mrf.mxu0 }
  0xb4   :  { %v1072_v29 = vld [vmem:[#allocation8 + $0x10] sm:$0xff] }
  0xb5   :  { %722 = vmatpush.bf16.msrb.mxu3 %v1075_v26 }
  0xb9   :  { %723 = vmatpush.bf16.msrb.mxu3 %v1074_v27 }
  0xbd   :  { %724 = vmatpush.bf16.msrb.mxu3 %v1073_v28 }
  0xc1   :  { %725 = vmatpush.bf16.msrb.mxu3 %v1072_v29 }
  0xc5   :  { %726 = vmatpush.bf16.msrb.mxu3 %v1071_v36 }
  0xc9   :  { %727 = vmatpush.bf16.msrb.mxu3 %v1070_v37 }
 0x12f   :  { %v225_v39 = vpop.f32.mrf.mxu1 }
 0x130   :  { %v229_v40 = vadd.f32 %v225_v39, %v150_v38  ;;  %v570_v38 = vld [vmem:[#allocation3 + $0x30] sm:$0xff] }
 0x132   :  { %v230_v41 = vmax.f32 %v229_v40, 0.0 }
 0x134   :  { %232 = vst [vmem:[#allocation9 + $0x8] sm:$0xff] %v230_v41  ;;  %v235_v42 = vpack.c.bf16 %v230_v41, %v230_v41 }
 0x136   :  { %308 = vmatmul.bf16.vlgmr.msra.gmra.mxu2 %v235_v42 }
 0x137   :  { %v227_v43 = vpop.f32.mrf.mxu1 }
 0x1b9   :  { %v309_v53 = vpop.f32.mrf.mxu2 }
 0x1ba   :  { %v313_v54 = vadd.f32 %v309_v53, %v234_v52 }
 0x1bc   :  { %v314_v55 = vmax.f32 %v313_v54, 0.0 }
 0x1be   :  { %316 = vst [vmem:[#allocation9 + $0x10] sm:$0xff] %v314_v55  ;;  %v319_v56 = vpack.c.bf16 %v314_v55, %v314_v55 }
 0x1c0   :  { %392 = vmatmul.bf16.vlgmr.msra.gmra.mxu3 %v319_v56 }
 0x1c1   :  { %v311_v57 = vpop.f32.mrf.mxu2 }
 0x243   :  { %v393_v3 = vpop.f32.mrf.mxu3 }
 0x244   :  { %v397_v4 = vadd.f32 %v393_v3, %v318_v2 }
 0x246   :  { %v398_v5 = vmax.f32 %v397_v4, 0.0 }
 0x248   :  { %400 = vst [vmem:[#allocation9 + $0x18] sm:$0xff] %v398_v5  ;;  %v403_v6 = vpack.c.bf16 %v398_v5, %v398_v5 }
 0x24a   :  { %476 = vmatmul.bf16.vlgmr.msrb.gmra.mxu0 %v403_v6 }
 0x24b   :  { %v395_v7 = vpop.f32.mrf.mxu3 }
 0x2c7   :  { %v477_v17 = vpop.f32.mrf.mxu0 }
 0x2c8   :  { %v481_v18 = vadd.f32 %v477_v17, %v402_v16 }
 0x2ca   :  { %v482_v19 = vmax.f32 %v481_v18, 0.0 }
 0x2cc   :  { %484 = vst [vmem:[#allocation9 + $0x20] sm:$0xff] %v482_v19  ;;  %v487_v20 = vpack.c.bf16 %v482_v19, %v482_v19 }
 0x2ce   :  { %560 = vmatmul.bf16.vlgmr.msrb.gmra.mxu1 %v487_v20 }
 0x2cf   :  { %v479_v21 = vpop.f32.mrf.mxu0 }
 0x34b   :  { %v561_v31 = vpop.f32.mrf.mxu1 }
 0x34c   :  { %v565_v32 = vadd.f32 %v561_v31, %v486_v30 }
 0x34e   :  { %v566_v33 = vmax.f32 %v565_v32, 0.0 }
 0x350   :  { %568 = vst [vmem:[#allocation9 + $0x28] sm:$0xff] %v566_v33  ;;  %v571_v34 = vpack.c.bf16 %v566_v33, %v566_v33 }
 0x352   :  { %644 = vmatmul.bf16.vlgmr.msrb.gmra.mxu2 %v571_v34 }
 0x353   :  { %v563_v35 = vpop.f32.mrf.mxu1 }
 0x3d5   :  { %v645_v39 = vpop.f32.mrf.mxu2 }
 0x3d6   :  { %v649_v40 = vadd.f32 %v645_v39, %v570_v38 }
 0x3d8   :  { %v650_v41 = vmax.f32 %v649_v40, 0.0 }
 0x3da   :  { %652 = vst [vmem:[#allocation9 + $0x30] sm:$0xff] %v650_v41  ;;  %v655_v42 = vpack.c.bf16 %v650_v41, %v650_v41 }
 0x3dc   :  { %728 = vmatmul.bf16.vlgmr.msrb.gmra.mxu3 %v655_v42 }
 0x3dd   :  { %v647_v43 = vpop.f32.mrf.mxu2 }
 0x45f   :  { %v729_v45 = vpop.f32.mrf.mxu3 }
 0x460   :  { %v733_v46 = vadd.f32 %v729_v45, %v654_v44 }
 0x462   :  { %v734_v47 = vmax.f32 %v733_v46, 0.0 }
 0x464   :  { %736 = vst [vmem:[#allocation9 + $0x38] sm:$0xff] %v734_v47 }
 0x465   :  { %750 = dma.vmem_to_hbm [thread:$0]  %s743_s29, 1024, %s745_s5, [#allocation5], %s1190_s22, %s1190_s22, %s1191_s23  }
 0x467   :  { %v731_v48 = vpop.f32.mrf.mxu3 }
 0x468   :  { %1186 = dma.done.wait [#allocation5], 1024  }
 0x469   :  { %1187 = vsyncadd [#allocation5], 4294966272 }
 0x46a   :  { %755 = vsyncpa [#allocation4], 1 }
 0x46b   :  { %756 = vsyncpa [#allocation7], 1 }
 0x46c   :  { %757 = vsyncpa [#allocation5], 1 }

</bundles_post_ra>
